<compile_context>
chip_gen: v7x
topology: tpu7x:2x2x1
jax: 0.10.0
libtpu: 0.0.40
codegen_flags: <defaults>
</compile_context>

<pallas_src>
import functools

import jax
import jax.numpy as jnp
from jax.experimental import pallas as pl
from jax.experimental.pallas import tpu as pltpu


def lstm_dense_kernel(bp, x_ref, wih_ref, whh_ref, b_ref, wd_ref, bd_ref, out_ref):
    """One-shot LSTM(1 layer) + Linear forward.

    bp      : static padded batch (multiple of 8)
    x_ref   : (T*bp, D)    time-major, zero-padded batch rows
    wih_ref : (D, 4H)      W_ih^T, i/f/o columns pre-scaled by 0.5
    whh_ref : (4H, 4H)     W_hh^T zero-padded on rows [H:], same pre-scale
    b_ref   : (1, 4H)      b_ih + b_hh, same pre-scale
    wd_ref  : (4H, Opad)   W_d^T zero-padded on rows [H:] and cols [O:]
    bd_ref  : (1, Opad)    b_d zero-padded
    out_ref : (T*bp, Opad)
    """
    TB = x_ref.shape[0]
    G = b_ref.shape[-1]          # 4H (= 128 for H=32)
    H = G // 4
    T = TB // bp

    wih = wih_ref[...]
    whh = whh_ref[...]
    bias = b_ref[...]

    # Non-recurrent precompute: input projection (+ fused bias) for all steps,
    # one lane-dense 2D matmul; per-step fetch below is a static row slice.
    xproj = jnp.dot(x_ref[...], wih, preferred_element_type=jnp.float32) + bias

    # Hoisted affine correction: a single tanh over the whole (bp, 4H) vreg
    # yields sigmoid on i/f/o lanes (0.5 pre-scale already folded into the
    # weights) and tanh on g lanes.
    lane = jax.lax.broadcasted_iota(jnp.int32, (bp, G), 1)
    is_g = (lane >= 2 * H) & (lane < 3 * H)
    post_scale = jnp.where(is_g, 1.0, 0.5).astype(jnp.float32)
    post_shift = jnp.where(is_g, 0.0, 0.5).astype(jnp.float32)

    # Full 128-lane carries; only lanes [0, H) are meaningful.  Junk in the
    # upper lanes is harmless: it is bounded and the zero-padded rows of
    # whh/wd kill its contribution to every matmul.
    h = jnp.zeros((bp, G), jnp.float32)
    c = jnp.zeros((bp, G), jnp.float32)

    # Serial recurrence, fully unrolled (T static & small).
    # TODO(synk): switch to lax.fori_loop + VMEM scratch for hs if T/H grow.
    hs = []
    for t in range(T):
        gates = xproj[t * bp:(t + 1) * bp, :] + jnp.dot(
            h, whh, preferred_element_type=jnp.float32)          # MXU
        ta = jnp.tanh(gates)                         # 1 EUP pass for all gates
        act = ta * post_scale + post_shift           # [sig(i)|sig(f)|tanh(g)|sig(o)]
        f_blk = pltpu.roll(act, 3 * H, axis=1)       # f -> lanes [0, H)   (XLU)
        g_blk = pltpu.roll(act, 2 * H, axis=1)       # g -> lanes [0, H)   (XLU)
        o_blk = pltpu.roll(act, 1 * H, axis=1)       # o -> lanes [0, H)   (XLU)
        c = f_blk * c + act * g_blk                  # lanes [0,H) valid
        h = o_blk * jnp.tanh(c)                      # 2nd (and last) EUP pass
        hs.append(h)

    # Epilogue: dense head hoisted out of the loop; lane-dense result + store.
    hs_all = jnp.concatenate(hs, axis=0)                           # (T*bp, 4H)
    y = jnp.dot(hs_all, wd_ref[...],
                preferred_element_type=jnp.float32) + bd_ref[...]
    out_ref[...] = y.astype(out_ref.dtype)           # single (T*bp, 128) store


@functools.partial(jax.jit, static_argnames=("n_out",))
def net1_forward(x_btd, params, n_out):
    """x_btd: (B, T, D_in) float32, batch_first. Returns (B, T, n_out)."""
    wih_s, whh_pad, bias_s, wd_pad, bd_pad = params
    B, T, D = x_btd.shape
    Bp = max(8, ((B + 7) // 8) * 8)        # pad batch to the 8-sublane grain
    o_pad = wd_pad.shape[1]

    # batch_first -> time-major, zero-pad batch, flatten to a 2D (T*Bp, D) slab.
    x_tbd = jnp.transpose(x_btd, (1, 0, 2))
    x2d = jnp.zeros((T, Bp, D), x_btd.dtype).at[:, :B, :].set(x_tbd)
    x2d = x2d.reshape(T * Bp, D)

    out2d = pl.pallas_call(
        functools.partial(lstm_dense_kernel, Bp),
        out_shape=jax.ShapeDtypeStruct((T * Bp, o_pad), jnp.float32),
        # Gridless single invocation: every operand is a whole-array VMEM block.
        # (Runs on one TensorCore; only worth gridding over batch on v7x once
        #  B grows enough to amortize per-grid-step overhead.)
        in_specs=[pl.BlockSpec(memory_space=pltpu.MemorySpace.VMEM)] * 6,
        out_specs=pl.BlockSpec(memory_space=pltpu.MemorySpace.VMEM),
    )(x2d, wih_s, whh_pad, bias_s, wd_pad, bd_pad)

    # Drop batch / output-lane padding; back to batch_first.
    out = out2d.reshape(T, Bp, o_pad)[:, :B, :n_out]
    return jnp.transpose(out, (1, 0, 2))


def make_params(key, d_in, hidden, n_out):
    """PyTorch U(-1/sqrt(H), 1/sqrt(H)) init; returns (kernel params, raw)."""
    ks = jax.random.split(key, 6)
    bound = 1.0 / jnp.sqrt(hidden)
    w_ih = jax.random.uniform(ks[0], (4 * hidden, d_in), jnp.float32, -bound, bound)
    w_hh = jax.random.uniform(ks[1], (4 * hidden, hidden), jnp.float32, -bound, bound)
    b_ih = jax.random.uniform(ks[2], (4 * hidden,), jnp.float32, -bound, bound)
    b_hh = jax.random.uniform(ks[3], (4 * hidden,), jnp.float32, -bound, bound)
    w_d = jax.random.uniform(ks[4], (n_out, hidden), jnp.float32, -bound, bound)
    b_d = jax.random.uniform(ks[5], (n_out,), jnp.float32, -bound, bound)

    G = 4 * hidden
    o_pad = 128  # lane-dense dense-head output; real cols sliced in the wrapper
    # 0.5 pre-scale on i/f/o gate columns (sigmoid-via-tanh); g columns untouched.
    gate_scale = jnp.concatenate([
        jnp.full((hidden,), 0.5), jnp.full((hidden,), 0.5),
        jnp.ones((hidden,)), jnp.full((hidden,), 0.5)]).astype(jnp.float32)

    wih_s = w_ih.T * gate_scale[None, :]                               # (D, 4H)
    whh_s = w_hh.T * gate_scale[None, :]                               # (H, 4H)
    whh_pad = jnp.zeros((G, G), jnp.float32).at[:hidden, :].set(whh_s)
    bias_s = ((b_ih + b_hh) * gate_scale)[None, :]                     # (1, 4H)
    wd_pad = jnp.zeros((G, o_pad), jnp.float32).at[:hidden, :n_out].set(w_d.T)
    bd_pad = jnp.zeros((1, o_pad), jnp.float32).at[0, :n_out].set(b_d)

    kernel_params = (wih_s, whh_pad, bias_s, wd_pad, bd_pad)
    raw = (w_ih, w_hh, b_ih, b_hh, w_d, b_d)
    return kernel_params, raw


def reference_forward(x_btd, raw):
    """Pure-JAX reference of nn.LSTM(batch_first) + nn.Linear."""
    w_ih, w_hh, b_ih, b_hh, w_d, b_d = raw
    B, T, _ = x_btd.shape
    H = w_hh.shape[1]

    def step(carry, x_t):
        h, c = carry
        gates = x_t @ w_ih.T + h @ w_hh.T + b_ih + b_hh
        i, f, g, o = jnp.split(gates, 4, axis=-1)
        i, f, o = jax.nn.sigmoid(i), jax.nn.sigmoid(f), jax.nn.sigmoid(o)
        g = jnp.tanh(g)
        c = f * c + i * g
        h = o * jnp.tanh(c)
        return (h, c), h

    h0 = jnp.zeros((B, H), jnp.float32)
    c0 = jnp.zeros((B, H), jnp.float32)
    (_, _), hs = jax.lax.scan(step, (h0, c0), jnp.transpose(x_btd, (1, 0, 2)))
    hs = jnp.transpose(hs, (1, 0, 2))                # (B, T, H)
    return hs @ w_d.T + b_d


if __name__ == "__main__":
    # Small shapes consistent with the module: input_dim=4, hidden=32, out=4.
    B, T, D_IN, HIDDEN, N_OUT = 2, 8, 4, 32, 4

    key = jax.random.PRNGKey(0)
    k_x, k_p = jax.random.split(key)
    x = jax.random.normal(k_x, (B, T, D_IN), jnp.float32)
    params, raw = make_params(k_p, D_IN, HIDDEN, N_OUT)

    out = net1_forward(x, params, n_out=N_OUT)
    out = jax.block_until_ready(out)

    ref = reference_forward(x, raw)
    assert out.shape == (B, T, N_OUT)
    assert jnp.allclose(out, ref, atol=2e-5, rtol=2e-5), float(
        jnp.max(jnp.abs(out - ref)))

    print("KERNEL_OK")
</pallas_src>

<mosaic_0001>
module attributes {stable_mosaic.version = 11 : i64} {
  func.func @lstm_dense_kernel(%arg0: memref<64x4xf32, #tpu.memory_space<vmem>>, %arg1: memref<4x128xf32, #tpu.memory_space<vmem>>, %arg2: memref<128x128xf32, #tpu.memory_space<vmem>>, %arg3: memref<1x128xf32, #tpu.memory_space<vmem>>, %arg4: memref<128x128xf32, #tpu.memory_space<vmem>>, %arg5: memref<1x128xf32, #tpu.memory_space<vmem>>, %arg6: memref<64x128xf32, #tpu.memory_space<vmem>>) attributes {dimension_semantics = [], scalar_prefetch = 0 : i64, scratch_operands = 0 : i64, tpu.core_type = #tpu.core_type<tc>} {
    %c0 = arith.constant 0 : index
    %c0_0 = arith.constant 0 : index
    %0 = vector.load %arg1[%c0, %c0_0] : memref<4x128xf32, #tpu.memory_space<vmem>>, vector<4x128xf32>
    %c0_1 = arith.constant 0 : index
    %c0_2 = arith.constant 0 : index
    %1 = vector.load %arg2[%c0_1, %c0_2] : memref<128x128xf32, #tpu.memory_space<vmem>>, vector<128x128xf32>
    %c0_3 = arith.constant 0 : index
    %c0_4 = arith.constant 0 : index
    %2 = vector.load %arg3[%c0_3, %c0_4] : memref<1x128xf32, #tpu.memory_space<vmem>>, vector<1x128xf32>
    %c0_5 = arith.constant 0 : index
    %c0_6 = arith.constant 0 : index
    %3 = vector.load %arg0[%c0_5, %c0_6] : memref<64x4xf32, #tpu.memory_space<vmem>>, vector<64x4xf32>
    %cst = arith.constant dense<0.000000e+00> : vector<64x128xf32>
    %4 = tpu.matmul %3, %0, %cst {dimension_numbers = #tpu.dot_dimension_numbers<[1], [0], [0], [1], [0, 0, 1, 1], [], []>} : vector<64x4xf32>, vector<4x128xf32>, vector<64x128xf32> -> vector<64x128xf32>
    %5 = vector.broadcast %2 : vector<1x128xf32> to vector<64x128xf32>
    %6 = arith.addf %4, %5 : vector<64x128xf32>
    %7 = tpu.iota {dimensions = array<i32: 1>} : vector<8x128xi32>
    %c64_i32 = arith.constant 64 : i32
    %8 = vector.broadcast %c64_i32 : i32 to vector<8x128xi32>
    %9 = arith.cmpi sge, %7, %8 : vector<8x128xi32>
    %c96_i32 = arith.constant 96 : i32
    %10 = vector.broadcast %c96_i32 : i32 to vector<8x128xi32>
    %11 = arith.cmpi slt, %7, %10 : vector<8x128xi32>
    %12 = arith.andi %9, %11 : vector<8x128xi1>
    %cst_7 = arith.constant 1.000000e+00 : f32
    %cst_8 = arith.constant 5.000000e-01 : f32
    %13 = vector.broadcast %cst_7 : f32 to vector<8x128xf32>
    %14 = vector.broadcast %cst_8 : f32 to vector<8x128xf32>
    %15 = arith.select %12, %13, %14 : vector<8x128xi1>, vector<8x128xf32>
    %cst_9 = arith.constant 0.000000e+00 : f32
    %cst_10 = arith.constant 5.000000e-01 : f32
    %16 = vector.broadcast %cst_9 : f32 to vector<8x128xf32>
    %17 = vector.broadcast %cst_10 : f32 to vector<8x128xf32>
    %18 = arith.select %12, %16, %17 : vector<8x128xi1>, vector<8x128xf32>
    %cst_11 = arith.constant 0.000000e+00 : f32
    %19 = vector.broadcast %cst_11 : f32 to vector<8x128xf32>
    %cst_12 = arith.constant 0.000000e+00 : f32
    %20 = vector.broadcast %cst_12 : f32 to vector<8x128xf32>
    %21 = vector.extract_strided_slice %6 {offsets = [0, 0], sizes = [8, 128], strides = [1, 1]} : vector<64x128xf32> to vector<8x128xf32>
    %cst_13 = arith.constant dense<0.000000e+00> : vector<8x128xf32>
    %22 = tpu.matmul %19, %1, %cst_13 {dimension_numbers = #tpu.dot_dimension_numbers<[1], [0], [0], [1], [0, 0, 1, 1], [], []>} : vector<8x128xf32>, vector<128x128xf32>, vector<8x128xf32> -> vector<8x128xf32>
    %23 = arith.addf %21, %22 : vector<8x128xf32>
    %24 = math.tanh %23 : vector<8x128xf32>
    %25 = arith.mulf %24, %15 : vector<8x128xf32>
    %26 = arith.addf %25, %18 : vector<8x128xf32>
    %c96_i32_14 = arith.constant 96 : i32
    %27 = tpu.dynamic_rotate %26 by %c96_i32_14 dim 1 : vector<8x128xf32>, i32 -> vector<8x128xf32>
    %c64_i32_15 = arith.constant 64 : i32
    %28 = tpu.dynamic_rotate %26 by %c64_i32_15 dim 1 : vector<8x128xf32>, i32 -> vector<8x128xf32>
    %c32_i32 = arith.constant 32 : i32
    %29 = tpu.dynamic_rotate %26 by %c32_i32 dim 1 : vector<8x128xf32>, i32 -> vector<8x128xf32>
    %30 = arith.mulf %27, %20 : vector<8x128xf32>
    %31 = arith.mulf %26, %28 : vector<8x128xf32>
    %32 = arith.addf %30, %31 : vector<8x128xf32>
    %33 = math.tanh %32 : vector<8x128xf32>
    %34 = arith.mulf %29, %33 : vector<8x128xf32>
    %35 = vector.extract_strided_slice %6 {offsets = [8, 0], sizes = [8, 128], strides = [1, 1]} : vector<64x128xf32> to vector<8x128xf32>
    %cst_16 = arith.constant dense<0.000000e+00> : vector<8x128xf32>
    %36 = tpu.matmul %34, %1, %cst_16 {dimension_numbers = #tpu.dot_dimension_numbers<[1], [0], [0], [1], [0, 0, 1, 1], [], []>} : vector<8x128xf32>, vector<128x128xf32>, vector<8x128xf32> -> vector<8x128xf32>
    %37 = arith.addf %35, %36 : vector<8x128xf32>
    %38 = math.tanh %37 : vector<8x128xf32>
    %39 = arith.mulf %38, %15 : vector<8x128xf32>
    %40 = arith.addf %39, %18 : vector<8x128xf32>
    %c96_i32_17 = arith.constant 96 : i32
    %41 = tpu.dynamic_rotate %40 by %c96_i32_17 dim 1 : vector<8x128xf32>, i32 -> vector<8x128xf32>
    %c64_i32_18 = arith.constant 64 : i32
    %42 = tpu.dynamic_rotate %40 by %c64_i32_18 dim 1 : vector<8x128xf32>, i32 -> vector<8x128xf32>
    %c32_i32_19 = arith.constant 32 : i32
    %43 = tpu.dynamic_rotate %40 by %c32_i32_19 dim 1 : vector<8x128xf32>, i32 -> vector<8x128xf32>
    %44 = arith.mulf %41, %32 : vector<8x128xf32>
    %45 = arith.mulf %40, %42 : vector<8x128xf32>
    %46 = arith.addf %44, %45 : vector<8x128xf32>
    %47 = math.tanh %46 : vector<8x128xf32>
    %48 = arith.mulf %43, %47 : vector<8x128xf32>
    %49 = vector.extract_strided_slice %6 {offsets = [16, 0], sizes = [8, 128], strides = [1, 1]} : vector<64x128xf32> to vector<8x128xf32>
    %cst_20 = arith.constant dense<0.000000e+00> : vector<8x128xf32>
    %50 = tpu.matmul %48, %1, %cst_20 {dimension_numbers = #tpu.dot_dimension_numbers<[1], [0], [0], [1], [0, 0, 1, 1], [], []>} : vector<8x128xf32>, vector<128x128xf32>, vector<8x128xf32> -> vector<8x128xf32>
    %51 = arith.addf %49, %50 : vector<8x128xf32>
    %52 = math.tanh %51 : vector<8x128xf32>
    %53 = arith.mulf %52, %15 : vector<8x128xf32>
    %54 = arith.addf %53, %18 : vector<8x128xf32>
    %c96_i32_21 = arith.constant 96 : i32
    %55 = tpu.dynamic_rotate %54 by %c96_i32_21 dim 1 : vector<8x128xf32>, i32 -> vector<8x128xf32>
    %c64_i32_22 = arith.constant 64 : i32
    %56 = tpu.dynamic_rotate %54 by %c64_i32_22 dim 1 : vector<8x128xf32>, i32 -> vector<8x128xf32>
    %c32_i32_23 = arith.constant 32 : i32
    %57 = tpu.dynamic_rotate %54 by %c32_i32_23 dim 1 : vector<8x128xf32>, i32 -> vector<8x128xf32>
    %58 = arith.mulf %55, %46 : vector<8x128xf32>
    %59 = arith.mulf %54, %56 : vector<8x128xf32>
    %60 = arith.addf %58, %59 : vector<8x128xf32>
    %61 = math.tanh %60 : vector<8x128xf32>
    %62 = arith.mulf %57, %61 : vector<8x128xf32>
    %63 = vector.extract_strided_slice %6 {offsets = [24, 0], sizes = [8, 128], strides = [1, 1]} : vector<64x128xf32> to vector<8x128xf32>
    %cst_24 = arith.constant dense<0.000000e+00> : vector<8x128xf32>
    %64 = tpu.matmul %62, %1, %cst_24 {dimension_numbers = #tpu.dot_dimension_numbers<[1], [0], [0], [1], [0, 0, 1, 1], [], []>} : vector<8x128xf32>, vector<128x128xf32>, vector<8x128xf32> -> vector<8x128xf32>
    %65 = arith.addf %63, %64 : vector<8x128xf32>
    %66 = math.tanh %65 : vector<8x128xf32>
    %67 = arith.mulf %66, %15 : vector<8x128xf32>
    %68 = arith.addf %67, %18 : vector<8x128xf32>
    %c96_i32_25 = arith.constant 96 : i32
    %69 = tpu.dynamic_rotate %68 by %c96_i32_25 dim 1 : vector<8x128xf32>, i32 -> vector<8x128xf32>
    %c64_i32_26 = arith.constant 64 : i32
    %70 = tpu.dynamic_rotate %68 by %c64_i32_26 dim 1 : vector<8x128xf32>, i32 -> vector<8x128xf32>
    %c32_i32_27 = arith.constant 32 : i32
    %71 = tpu.dynamic_rotate %68 by %c32_i32_27 dim 1 : vector<8x128xf32>, i32 -> vector<8x128xf32>
    %72 = arith.mulf %69, %60 : vector<8x128xf32>
    %73 = arith.mulf %68, %70 : vector<8x128xf32>
    %74 = arith.addf %72, %73 : vector<8x128xf32>
    %75 = math.tanh %74 : vector<8x128xf32>
    %76 = arith.mulf %71, %75 : vector<8x128xf32>
    %77 = vector.extract_strided_slice %6 {offsets = [32, 0], sizes = [8, 128], strides = [1, 1]} : vector<64x128xf32> to vector<8x128xf32>
    %cst_28 = arith.constant dense<0.000000e+00> : vector<8x128xf32>
    %78 = tpu.matmul %76, %1, %cst_28 {dimension_numbers = #tpu.dot_dimension_numbers<[1], [0], [0], [1], [0, 0, 1, 1], [], []>} : vector<8x128xf32>, vector<128x128xf32>, vector<8x128xf32> -> vector<8x128xf32>
    %79 = arith.addf %77, %78 : vector<8x128xf32>
    %80 = math.tanh %79 : vector<8x128xf32>
    %81 = arith.mulf %80, %15 : vector<8x128xf32>
    %82 = arith.addf %81, %18 : vector<8x128xf32>
    %c96_i32_29 = arith.constant 96 : i32
    %83 = tpu.dynamic_rotate %82 by %c96_i32_29 dim 1 : vector<8x128xf32>, i32 -> vector<8x128xf32>
    %c64_i32_30 = arith.constant 64 : i32
    %84 = tpu.dynamic_rotate %82 by %c64_i32_30 dim 1 : vector<8x128xf32>, i32 -> vector<8x128xf32>
    %c32_i32_31 = arith.constant 32 : i32
    %85 = tpu.dynamic_rotate %82 by %c32_i32_31 dim 1 : vector<8x128xf32>, i32 -> vector<8x128xf32>
    %86 = arith.mulf %83, %74 : vector<8x128xf32>
    %87 = arith.mulf %82, %84 : vector<8x128xf32>
    %88 = arith.addf %86, %87 : vector<8x128xf32>
    %89 = math.tanh %88 : vector<8x128xf32>
    %90 = arith.mulf %85, %89 : vector<8x128xf32>
    %91 = vector.extract_strided_slice %6 {offsets = [40, 0], sizes = [8, 128], strides = [1, 1]} : vector<64x128xf32> to vector<8x128xf32>
    %cst_32 = arith.constant dense<0.000000e+00> : vector<8x128xf32>
    %92 = tpu.matmul %90, %1, %cst_32 {dimension_numbers = #tpu.dot_dimension_numbers<[1], [0], [0], [1], [0, 0, 1, 1], [], []>} : vector<8x128xf32>, vector<128x128xf32>, vector<8x128xf32> -> vector<8x128xf32>
    %93 = arith.addf %91, %92 : vector<8x128xf32>
    %94 = math.tanh %93 : vector<8x128xf32>
    %95 = arith.mulf %94, %15 : vector<8x128xf32>
    %96 = arith.addf %95, %18 : vector<8x128xf32>
    %c96_i32_33 = arith.constant 96 : i32
    %97 = tpu.dynamic_rotate %96 by %c96_i32_33 dim 1 : vector<8x128xf32>, i32 -> vector<8x128xf32>
    %c64_i32_34 = arith.constant 64 : i32
    %98 = tpu.dynamic_rotate %96 by %c64_i32_34 dim 1 : vector<8x128xf32>, i32 -> vector<8x128xf32>
    %c32_i32_35 = arith.constant 32 : i32
    %99 = tpu.dynamic_rotate %96 by %c32_i32_35 dim 1 : vector<8x128xf32>, i32 -> vector<8x128xf32>
    %100 = arith.mulf %97, %88 : vector<8x128xf32>
    %101 = arith.mulf %96, %98 : vector<8x128xf32>
    %102 = arith.addf %100, %101 : vector<8x128xf32>
    %103 = math.tanh %102 : vector<8x128xf32>
    %104 = arith.mulf %99, %103 : vector<8x128xf32>
    %105 = vector.extract_strided_slice %6 {offsets = [48, 0], sizes = [8, 128], strides = [1, 1]} : vector<64x128xf32> to vector<8x128xf32>
    %cst_36 = arith.constant dense<0.000000e+00> : vector<8x128xf32>
    %106 = tpu.matmul %104, %1, %cst_36 {dimension_numbers = #tpu.dot_dimension_numbers<[1], [0], [0], [1], [0, 0, 1, 1], [], []>} : vector<8x128xf32>, vector<128x128xf32>, vector<8x128xf32> -> vector<8x128xf32>
    %107 = arith.addf %105, %106 : vector<8x128xf32>
    %108 = math.tanh %107 : vector<8x128xf32>
    %109 = arith.mulf %108, %15 : vector<8x128xf32>
    %110 = arith.addf %109, %18 : vector<8x128xf32>
    %c96_i32_37 = arith.constant 96 : i32
    %111 = tpu.dynamic_rotate %110 by %c96_i32_37 dim 1 : vector<8x128xf32>, i32 -> vector<8x128xf32>
    %c64_i32_38 = arith.constant 64 : i32
    %112 = tpu.dynamic_rotate %110 by %c64_i32_38 dim 1 : vector<8x128xf32>, i32 -> vector<8x128xf32>
    %c32_i32_39 = arith.constant 32 : i32
    %113 = tpu.dynamic_rotate %110 by %c32_i32_39 dim 1 : vector<8x128xf32>, i32 -> vector<8x128xf32>
    %114 = arith.mulf %111, %102 : vector<8x128xf32>
    %115 = arith.mulf %110, %112 : vector<8x128xf32>
    %116 = arith.addf %114, %115 : vector<8x128xf32>
    %117 = math.tanh %116 : vector<8x128xf32>
    %118 = arith.mulf %113, %117 : vector<8x128xf32>
    %119 = vector.extract_strided_slice %6 {offsets = [56, 0], sizes = [8, 128], strides = [1, 1]} : vector<64x128xf32> to vector<8x128xf32>
    %cst_40 = arith.constant dense<0.000000e+00> : vector<8x128xf32>
    %120 = tpu.matmul %118, %1, %cst_40 {dimension_numbers = #tpu.dot_dimension_numbers<[1], [0], [0], [1], [0, 0, 1, 1], [], []>} : vector<8x128xf32>, vector<128x128xf32>, vector<8x128xf32> -> vector<8x128xf32>
    %121 = arith.addf %119, %120 : vector<8x128xf32>
    %122 = math.tanh %121 : vector<8x128xf32>
    %123 = arith.mulf %122, %15 : vector<8x128xf32>
    %124 = arith.addf %123, %18 : vector<8x128xf32>
    %c96_i32_41 = arith.constant 96 : i32
    %125 = tpu.dynamic_rotate %124 by %c96_i32_41 dim 1 : vector<8x128xf32>, i32 -> vector<8x128xf32>
    %c64_i32_42 = arith.constant 64 : i32
    %126 = tpu.dynamic_rotate %124 by %c64_i32_42 dim 1 : vector<8x128xf32>, i32 -> vector<8x128xf32>
    %c32_i32_43 = arith.constant 32 : i32
    %127 = tpu.dynamic_rotate %124 by %c32_i32_43 dim 1 : vector<8x128xf32>, i32 -> vector<8x128xf32>
    %128 = arith.mulf %125, %116 : vector<8x128xf32>
    %129 = arith.mulf %124, %126 : vector<8x128xf32>
    %130 = arith.addf %128, %129 : vector<8x128xf32>
    %131 = math.tanh %130 : vector<8x128xf32>
    %132 = arith.mulf %127, %131 : vector<8x128xf32>
    %133 = tpu.concatenate %34, %48, %62, %76, %90, %104, %118, %132 in 0 : vector<8x128xf32>, vector<8x128xf32>, vector<8x128xf32>, vector<8x128xf32>, vector<8x128xf32>, vector<8x128xf32>, vector<8x128xf32>, vector<8x128xf32> -> vector<64x128xf32>
    %c0_44 = arith.constant 0 : index
    %c0_45 = arith.constant 0 : index
    %134 = vector.load %arg4[%c0_44, %c0_45] : memref<128x128xf32, #tpu.memory_space<vmem>>, vector<128x128xf32>
    %cst_46 = arith.constant dense<0.000000e+00> : vector<64x128xf32>
    %135 = tpu.matmul %133, %134, %cst_46 {dimension_numbers = #tpu.dot_dimension_numbers<[1], [0], [0], [1], [0, 0, 1, 1], [], []>} : vector<64x128xf32>, vector<128x128xf32>, vector<64x128xf32> -> vector<64x128xf32>
    %c0_47 = arith.constant 0 : index
    %c0_48 = arith.constant 0 : index
    %136 = vector.load %arg5[%c0_47, %c0_48] : memref<1x128xf32, #tpu.memory_space<vmem>>, vector<1x128xf32>
    %137 = vector.broadcast %136 : vector<1x128xf32> to vector<64x128xf32>
    %138 = arith.addf %135, %137 : vector<64x128xf32>
    %c0_49 = arith.constant 0 : index
    %c0_50 = arith.constant 0 : index
    %139 = vector.load %arg6[%c0_49, %c0_50] : memref<64x128xf32, #tpu.memory_space<vmem>>, vector<64x128xf32>
    tpu.vector_store %arg6[%c0_49, %c0_50], %138 {strides = array<i32>} : memref<64x128xf32, #tpu.memory_space<vmem>>, vector<64x128xf32>,
    return
  }
}

</mosaic_0001>

<bundles_post_ra>
// kernel: net1_forward.1
= control target key start
LH: loop header
LB: loop body
LE: loop exit
PB: predicated region body
PF: predicated region fallthrough
CT: control target
= control target key end

     0   :  { %11 = vsyncpa [#allocation3], 0  ;;  %s2265_s0 = inlined_call_operand.vmem [shape: f32[64,4], index: 0, kind: input, shape index: {}]   ;;  %s2266_s1 = inlined_call_operand.vmem [shape: f32[4,128], index: 1, kind: input, shape index: {}]   ;;  %s2267_s2 = inlined_call_operand.hbm [shape: f32[128,128], index: 2, kind: input, shape index: {}]   ;;  %s2268_s3 = inlined_call_operand.vmem [shape: f32[1,128], index: 3, kind: input, shape index: {}]   ;;  %s2269_s4 = inlined_call_operand.hbm [shape: f32[128,128], index: 4, kind: input, shape index: {}]   ;;  %s2270_s5 = inlined_call_operand.vmem [shape: f32[1,128], index: 5, kind: input, shape index: {}]   ;;  %s2271_s6 = inlined_call_operand.vmem [shape: f32[64,128], index: 6, kind: output, shape index: {}]  }
   0x1   :  { %12 = vsyncpa [#allocation5], 0  ;;  %s1879_s21 = smov [#allocation2]   ;;  %s1831_s25 = scalar_lea.hbm %s2267_s2, 2048 }
   0x2   :  { %s22_s22 = sshll.u32 %s1879_s21, 4  ;;  %p1832_p0 = scmp.ne.s32.totalorder %s2267_s2, %s1831_s25  ;;  %s23_s22 = int_to_ptr.vmem [resolvable:$true] %s22_s22 }
   0x3   :  { %p1835_p1 = scmp.lt.u32.totalorder %s1831_s25, %s2267_s2 }
   0x5   :  { %p1837_p2 = pnand %p1835_p1, %p1832_p0 }
   0x7   :  { %1840 = shalt.err (!%p1837_p2)
}
   0x8   :  { %s1841_s30 = scalar_lea.vmem %s23_s22, 2048  ;;  %p1846_p4 = scmp.lt.s32.totalorder %s23_s22, %s23_s22 }
   0x9   :  { %p1842_p3 = scmp.ne.s32.totalorder %s23_s22, %s1841_s30  ;;  %p1847_p5 = scmp.lt.s32.totalorder %s1841_s30, %s1841_s30 }
   0xb   :  { %p1848_p6 = por %p1847_p5, %p1846_p4 }
   0xd   :  { %p1849_p7 = pnand %p1848_p6, %p1842_p3 }
   0xf   :  { %1852 = shalt.err (!%p1849_p7)
}
  0x10   :  { %s1880_s7 = smov 128   ;;  %s1881_s8 = smov 8  }
  0x11   :  { %28 = dma.hbm_to_vmem [thread:$0]  %s2267_s2, 2048, %s23_s22, [#allocation3], %s1880_s7, %s1880_s7, %s1881_s8  }
  0x12   :  { %s1882_s11 = smov [#allocation4]   ;;  %s1853_s15 = scalar_lea.hbm %s2269_s4, 2048 }
  0x13   :  { %s36_s12 = sshll.u32 %s1882_s11, 4  ;;  %p1854_p8 = scmp.ne.s32.totalorder %s2269_s4, %s1853_s15  ;;  %s37_s12 = int_to_ptr.vmem [resolvable:$true] %s36_s12 }
  0x14   :  { %p1857_p9 = scmp.lt.u32.totalorder %s1853_s15, %s2269_s4 }
  0x16   :  { %p1859_p10 = pnand %p1857_p9, %p1854_p8 }
  0x18   :  { %1862 = shalt.err (!%p1859_p10)
}
  0x19   :  { %s1863_s20 = scalar_lea.vmem %s37_s12, 2048  ;;  %p1868_p12 = scmp.lt.s32.totalorder %s37_s12, %s37_s12 }
  0x1a   :  { %p1864_p11 = scmp.ne.s32.totalorder %s37_s12, %s1863_s20  ;;  %p1869_p13 = scmp.lt.s32.totalorder %s1863_s20, %s1863_s20 }
  0x1c   :  { %p1870_p0 = por %p1869_p13, %p1868_p12 }
  0x1e   :  { %p1871_p1 = pnand %p1870_p0, %p1864_p11 }
  0x20   :  { %1874 = shalt.err (!%p1871_p1)
}
  0x21   :  { %42 = dma.hbm_to_vmem [thread:$0]  %s2269_s4, 2048, %s37_s12, [#allocation5], %s1880_s7, %s1880_s7, %s1881_s8  }
  0x22   :  { %1875 = dma.done.wait [#allocation3], 2048  }
  0x23   :  { %1876 = vsyncadd [#allocation3], 4294965248 }
  0x24   :  { %1877 = dma.done.wait [#allocation5], 2048  }
  0x25   :  { %1878 = vsyncadd [#allocation5], 4294965248  ;;  %v1883_v0 = vmov 0.0|0.0   ;;  %vm1884_vm0 = vmmov 0   ;;  %v1885_v1 = vmov 0.0   ;;  %v52_v2 = vld [vmem:[#allocation2] sm:$0xff]  ;;  %v217_v33 = vlaneseq }
  0x26   :  { %1564 = vmatprep.subr.bf16.mxu0 %v1883_v0  ;;  %1272 = vmatprep.mubr.msk.f32.mxu0 %vm1884_vm0, %v1885_v1  ;;  %v53_v3 = vld [vmem:[#allocation2 + $0x8] sm:$0xff]  ;;  %v54_v4 = vld [vmem:[#allocation2 + $0x10] sm:$0xff]  ;;  %v55_v6 = vld [vmem:[#allocation2 + $0x18] sm:$0xff]  ;;  %vm108_vm1 = vcmask 1043456   ;;  %vm83_vm2 = vcmask 31744   ;;  %v1886_v38 = vmov 0.5  }
  0x27   :  { %v1952_v5 = vpack.c.bf16 %v53_v3, %v52_v2  ;;  %v1955_v7 = vpack.c.bf16 %v55_v6, %v54_v4  ;;  %v56_v8 = vld [vmem:[#allocation2 + $0x20] sm:$0xff]  ;;  %v57_v9 = vld [vmem:[#allocation2 + $0x28] sm:$0xff]  ;;  %v58_v14 = vld [vmem:[#allocation2 + $0x30] sm:$0xff]  ;;  %v218_v37 = vand.u32 127, %v217_v33  ;;  %s1888_s28 = smov 96   ;;  %s1889_s29 = smov 64  }
  0x28   :  { %v51_v10 = vld [vmem:[%s2266_s1] sm:$0xf]  ;;  %v70_v12 = vld [vmem:[%s2265_s0 + $0x8] sm:$0xff]  ;;  %v1969_v13 = vpack.c.bf16 %v57_v9, %v56_v8  ;;  %v59_v15 = vld [vmem:[#allocation2 + $0x38] sm:$0xff] }
  0x29   :  { %1566 = vmatpush3.bf16.msra.mxu0 %v1952_v5  ;;  %1226 = vmatprep.subr.msk.mxu1 %vm108_vm1, %v51_v10  ;;  %v69_v11 = vld [vmem:[%s2265_s0] sm:$0xff]  ;;  %v1977_v16 = vpack.c.bf16 %v59_v15, %v58_v14  ;;  %v61_v18 = vld [vmem:[#allocation2 + $0x48] sm:$0xff]  ;;  %v62_v20 = vld [vmem:[#allocation2 + $0x50] sm:$0xff]  ;;  %vm219_vm3 = vcmp.ge.s32.totalorder %v218_v37, 64  ;;  %vm220_vm4 = vcmp.lt.s32.totalorder %v218_v37, 96 }
  0x2a   :  { %1567 = vmatprep.subr.bf16.mxu0 %v1883_v0  ;;  %1227 = vmatpush3.msk.msra.mxu1 %vm108_vm1, %v51_v10  ;;  %v60_v17 = vld [vmem:[#allocation2 + $0x40] sm:$0xff]  ;;  %v63_v21 = vld [vmem:[#allocation2 + $0x58] sm:$0xff]  ;;  %v65_v24 = vld [vmem:[#allocation2 + $0x68] sm:$0xff] }
  0x2b   :  { %1228 = vmatprep.mubr.msk.f32.mxu1 %vm83_vm2, %v69_v11  ;;  %1612 = vmatprep.subr.bf16.mxu1 %v1883_v0  ;;  %v1983_v19 = vpack.c.bf16 %v61_v18, %v60_v17  ;;  %v1989_v22 = vpack.c.bf16 %v63_v21, %v62_v20  ;;  %v64_v23 = vld [vmem:[#allocation2 + $0x60] sm:$0xff]  ;;  %v66_v26 = vld [vmem:[#allocation2 + $0x70] sm:$0xff]  ;;  %v67_v27 = vld [vmem:[#allocation2 + $0x78] sm:$0xff] }
  0x2c   :  { %1229 = vmatmul.mubr.msk.f32.vlgmr.msra.gmra.mrb[0].mxu1 %vm83_vm2, %v70_v12  ;;  %v1995_v25 = vpack.c.bf16 %v65_v24, %v64_v23  ;;  %v2001_v28 = vpack.c.bf16 %v67_v27, %v66_v26  ;;  %v2034_v31 = vld [vmem:[%s2268_s3] ss:$0 sm:$0xff]  ;;  %vm221_vm5 = vmand %vm219_vm3, %vm220_vm4  ;;  %s1887_s3 = smov 32   ;;  %v71_v56 = vld [vmem:[%s2265_s0 + $0x10] sm:$0xff] }
  0x2d   :  { %1569 = vmatpush3.bf16.msra.mxu0 %v1955_v7  ;;  %1614 = vmatpush3.bf16.msra.mxu1 %v1952_v5  ;;  %v2037_v39 = vsel %vm221_vm5, 1.0, %v1886_v38  ;;  %v2039_v41 = vsel %vm221_vm5, 0.0, %v1886_v38  ;;  %v72_v57 = vld [vmem:[%s2265_s0 + $0x18] sm:$0xff]  ;;  %v73_v58 = vld [vmem:[%s2265_s0 + $0x20] sm:$0xff]  ;;  %v74_v59 = vld [vmem:[%s2265_s0 + $0x28] sm:$0xff] }
  0x2e   :  { %1570 = vmatprep.subr.bf16.mxu0 %v1883_v0  ;;  %1615 = vmatprep.subr.bf16.mxu1 %v1883_v0  ;;  %v75_v62 = vld [vmem:[%s2265_s0 + $0x30] sm:$0xff]  ;;  %v76_v2 = vld [vmem:[%s2265_s0 + $0x38] sm:$0xff] }
  0x2f   :  { %1231 = vmatprep.mubr.msk.f32.mxu1 %vm83_vm2, %v71_v56 }
  0x30   :  { %1232 = vmatmul.mubr.msk.f32.gmra.mrb[2].mxu1 %vm83_vm2, %v72_v57 }
  0x31   :  { %1572 = vmatpush3.bf16.msra.mxu0 %v1969_v13  ;;  %1617 = vmatpush3.bf16.msra.mxu1 %v1955_v7 }
  0x32   :  { %1573 = vmatprep.subr.bf16.mxu0 %v1883_v0  ;;  %1618 = vmatprep.subr.bf16.mxu1 %v1883_v0 }
  0x33   :  { %1234 = vmatprep.mubr.msk.f32.mxu1 %vm83_vm2, %v73_v58 }
  0x34   :  { %1235 = vmatmul.mubr.msk.f32.gmra.mrb[4].mxu1 %vm83_vm2, %v74_v59 }
  0x35   :  { %1575 = vmatpush3.bf16.msra.mxu0 %v1977_v16  ;;  %1620 = vmatpush3.bf16.msra.mxu1 %v1969_v13 }
  0x36   :  { %1576 = vmatprep.subr.bf16.mxu0 %v1883_v0  ;;  %1621 = vmatprep.subr.bf16.mxu1 %v1883_v0 }
  0x37   :  { %1237 = vmatprep.mubr.msk.f32.mxu1 %vm83_vm2, %v75_v62 }
  0x38   :  { %1238 = vmatmul.mubr.msk.f32.gmra.mrb[6].mxu1 %vm83_vm2, %v76_v2 }
  0x39   :  { %1578 = vmatpush3.bf16.msra.mxu0 %v1983_v19  ;;  %1623 = vmatpush3.bf16.msra.mxu1 %v1977_v16 }
  0x3a   :  { %1579 = vmatprep.subr.bf16.mxu0 %v1883_v0  ;;  %1624 = vmatprep.subr.bf16.mxu1 %v1883_v0 }
  0x3b   :  { %1342 = vmatprep.mubr.msk.f32.mxu1 %vm1884_vm0, %v1885_v1 }
  0x3d   :  { %1581 = vmatpush3.bf16.msra.mxu0 %v1989_v22  ;;  %1626 = vmatpush3.bf16.msra.mxu1 %v1983_v19 }
  0x3e   :  { %1582 = vmatprep.subr.bf16.mxu0 %v1883_v0  ;;  %1627 = vmatprep.subr.bf16.mxu1 %v1883_v0 }
  0x41   :  { %1584 = vmatpush3.bf16.msra.mxu0 %v1995_v25  ;;  %1629 = vmatpush3.bf16.msra.mxu1 %v1989_v22 }
  0x42   :  { %1585 = vmatprep.subr.bf16.mxu0 %v1883_v0  ;;  %1630 = vmatprep.subr.bf16.mxu1 %v1883_v0 }
  0x45   :  { %1587 = vmatpush3.bf16.msra.mxu0 %v2001_v28  ;;  %1632 = vmatpush3.bf16.msra.mxu1 %v1995_v25 }
  0x46   :  { %1588 = vmatprep.subr.bf16.mxu0 %v1883_v0  ;;  %1633 = vmatprep.subr.bf16.mxu1 %v1883_v0 }
  0x48   :  { %1273 = vmatmul.mubr.f32.vlgmr.msra.gmra.mrb[0].mxu0 %v1885_v1 }
  0x49   :  { %1590 = vmatpush3.bf16.msra.mxu0 %v1952_v5  ;;  %1307 = vmatprep.mubr.msk.f32.mxu0 %vm1884_vm0, %v1885_v1 }
  0x4a   :  { %1591 = vmatprep.subr.bf16.mxu0 %v1883_v0  ;;  %1635 = vmatpush3.bf16.msra.mxu1 %v2001_v28 }
  0x4b   :  { %1660 = vmatprep.subr.bf16.mxu1 %v1883_v0 }
  0x4d   :  { %1593 = vmatpush3.bf16.msra.mxu0 %v1955_v7 }
  0x4e   :  { %1594 = vmatprep.subr.bf16.mxu0 %v1883_v0 }
  0x51   :  { %1596 = vmatpush3.bf16.msra.mxu0 %v1969_v13 }
  0x52   :  { %1597 = vmatprep.subr.bf16.mxu0 %v1883_v0 }
  0x55   :  { %1599 = vmatpush3.bf16.msra.mxu0 %v1977_v16 }
  0x56   :  { %1600 = vmatprep.subr.bf16.mxu0 %v1883_v0 }
  0x59   :  { %1602 = vmatpush3.bf16.msra.mxu0 %v1983_v19 }
  0x5a   :  { %1603 = vmatprep.subr.bf16.mxu0 %v1883_v0 }
  0x5d   :  { %1605 = vmatpush3.bf16.msra.mxu0 %v1989_v22 }
  0x5e   :  { %1606 = vmatprep.subr.bf16.mxu0 %v1883_v0 }
  0x61   :  { %1608 = vmatpush3.bf16.msra.mxu0 %v1995_v25 }
  0x62   :  { %1609 = vmatprep.subr.bf16.mxu0 %v1883_v0 }
  0x65   :  { %1611 = vmatpush3.bf16.msra.mxu0 %v2001_v28 }
  0x66   :  { %1636 = vmatprep.subr.bf16.mxu0 %v1883_v0 }
  0xff   :  { %v1230_v29 = vpop.f32.mrb[0].mxu1 }
 0x100   :  { %v178_v30 = vpop.f32.mrb[1].mxu1  ;;  %v184_v52 = vadd.f32 %v1230_v29, %v2034_v31 }
 0x101   :  { %v179_v32 = vadd.f32 %v2034_v31, %v178_v30 }
 0x103   :  { %v1233_v14 = vpop.f32.mrb[2].mxu1 }
 0x104   :  { %v188_v15 = vpop.f32.mrb[3].mxu1 }
 0x105   :  { %v189_v23 = vadd.f32 %v2034_v31, %v188_v15 }
 0x107   :  { %v2120_v17 = vpop.f32.mrb[4].mxu1 }
 0x108   :  { %v2122_v18 = vpop.f32.mrb[5].mxu1 }
 0x109   :  { %v199_v59 = vadd.f32 %v2034_v31, %v2122_v18 }
 0x10b   :  { %v2124_v20 = vpop.f32.mrb[6].mxu1 }
 0x10c   :  { %v2126_v21 = vpop.f32.mrb[7].mxu1 }
 0x11b   :  { %v290_v34 = vpop.f32.mrb[0].mxu0 }
 0x11c   :  { %v294_v35 = vadd.f32 %v290_v34, %v179_v32  ;;  %v1274_v36 = vpop.f32.mrb[1].mxu0 }
 0x11e   :  { %1799 = vtanh.f32 %v294_v35 }
 0x128   :  { %v1800_v40 = vpop.eup %1799 }
 0x129   :  { %v296_v42 = vmul.f32 %v1800_v40, %v2037_v39 }
 0x12b   :  { %v297_v43 = vadd.f32 %v296_v42, %v2039_v41 }
 0x12d   :  { %302 = vrot.lane.b32.xlu1 %v297_v43, %s1887_s3  ;;  %298 = vrot.lane.b32.xlu0 %v297_v43, %s1888_s28 }
 0x131   :  { %300 = vrot.lane.b32.xlu0 %v297_v43, %s1889_s29 }
 0x19f   :  { %v299_v44 = vpop.permute.xlu0 %298  ;;  %v303_v50 = vpop.permute.xlu1 %302 }
 0x1a0   :  { %v304_v46 = vmul.f32 0.0, %v299_v44 }
 0x1a3   :  { %v301_v45 = vpop.permute.xlu0 %300 }
 0x1a4   :  { %v305_v47 = vmul.f32 %v301_v45, %v297_v43  ;;  %v194_v43 = vadd.f32 %v1233_v14, %v2034_v31 }
 0x1a6   :  { %v306_v48 = vadd.f32 %v305_v47, %v304_v46 }
 0x1a8   :  { %1801 = vtanh.f32 %v306_v48 }
 0x1b2   :  { %v1802_v49 = vpop.eup %1801 }
 0x1b3   :  { %v2046_v51 = vmul.f32 %v1802_v49, %v303_v50 }
 0x1b5   :  { %1308 = vmatmul.mubr.f32.vlgmr.msra.gmra.mrb[2].mxu0 %v2046_v51 }
 0x1b6   :  { %1638 = vmatpush3.bf16.msra.mxu0 %v1952_v5  ;;  %1377 = vmatprep.mubr.msk.f32.mxu0 %vm1884_vm0, %v1885_v1 }
 0x1b7   :  { %1639 = vmatprep.subr.bf16.mxu0 %v1883_v0 }
 0x1ba   :  { %1641 = vmatpush3.bf16.msra.mxu0 %v1955_v7 }
 0x1bb   :  { %1642 = vmatprep.subr.bf16.mxu0 %v1883_v0 }
 0x1be   :  { %1644 = vmatpush3.bf16.msra.mxu0 %v1969_v13 }
 0x1bf   :  { %1645 = vmatprep.subr.bf16.mxu0 %v1883_v0 }
 0x1c2   :  { %1647 = vmatpush3.bf16.msra.mxu0 %v1977_v16 }
 0x1c3   :  { %1648 = vmatprep.subr.bf16.mxu0 %v1883_v0 }
 0x1c6   :  { %1650 = vmatpush3.bf16.msra.mxu0 %v1983_v19 }
 0x1c7   :  { %1651 = vmatprep.subr.bf16.mxu0 %v1883_v0 }
 0x1ca   :  { %1653 = vmatpush3.bf16.msra.mxu0 %v1989_v22 }
 0x1cb   :  { %1654 = vmatprep.subr.bf16.mxu0 %v1883_v0 }
 0x1ce   :  { %1656 = vmatpush3.bf16.msra.mxu0 %v1995_v25 }
 0x1cf   :  { %1657 = vmatprep.subr.bf16.mxu0 %v1883_v0 }
 0x1d2   :  { %1659 = vmatpush3.bf16.msra.mxu0 %v2001_v28 }
 0x1d3   :  { %1684 = vmatprep.subr.bf16.mxu0 %v1883_v0 }
 0x288   :  { %v375_v53 = vpop.f32.mrb[2].mxu0 }
 0x289   :  { %v379_v54 = vadd.f32 %v375_v53, %v184_v52  ;;  %v1309_v55 = vpop.f32.mrb[3].mxu0 }
 0x28b   :  { %1803 = vtanh.f32 %v379_v54 }
 0x295   :  { %v1804_v60 = vpop.eup %1803 }
 0x296   :  { %v381_v61 = vmul.f32 %v1804_v60, %v2037_v39 }
 0x298   :  { %v382_v63 = vadd.f32 %v381_v61, %v2039_v41 }
 0x29a   :  { %385 = vrot.lane.b32.xlu0 %v382_v63, %s1889_s29  ;;  %383 = vrot.lane.b32.xlu1 %v382_v63, %s1888_s28 }
 0x29e   :  { %387 = vrot.lane.b32.xlu1 %v382_v63, %s1887_s3 }
 0x30c   :  { %v386_v3 = vpop.permute.xlu0 %385  ;;  %v384_v4 = vpop.permute.xlu1 %383 }
 0x30d   :  { %v390_v6 = vmul.f32 %v386_v3, %v382_v63  ;;  %v389_v8 = vmul.f32 %v384_v4, %v306_v48 }
 0x30f   :  { %v391_v9 = vadd.f32 %v390_v6, %v389_v8 }
 0x310   :  { %v388_v11 = vpop.permute.xlu1 %387 }
 0x311   :  { %1805 = vtanh.f32 %v391_v9 }
 0x31b   :  { %v1806_v10 = vpop.eup %1805 }
 0x31c   :  { %v2099_v12 = vmul.f32 %v1806_v10, %v388_v11 }
 0x31e   :  { %1343 = vmatmul.mubr.f32.vlgmr.msra.gmra.mrb[8].mxu1 %v2099_v12 }
 0x31f   :  { %1662 = vmatpush3.bf16.msra.mxu1 %v1952_v5  ;;  %1412 = vmatprep.mubr.msk.f32.mxu1 %vm1884_vm0, %v1885_v1 }
 0x320   :  { %1663 = vmatprep.subr.bf16.mxu1 %v1883_v0 }
 0x323   :  { %1665 = vmatpush3.bf16.msra.mxu1 %v1955_v7 }
 0x324   :  { %1666 = vmatprep.subr.bf16.mxu1 %v1883_v0 }
 0x327   :  { %1668 = vmatpush3.bf16.msra.mxu1 %v1969_v13 }
 0x328   :  { %1669 = vmatprep.subr.bf16.mxu1 %v1883_v0 }
 0x32b   :  { %1671 = vmatpush3.bf16.msra.mxu1 %v1977_v16 }
 0x32c   :  { %1672 = vmatprep.subr.bf16.mxu1 %v1883_v0 }
 0x32f   :  { %1674 = vmatpush3.bf16.msra.mxu1 %v1983_v19 }
 0x330   :  { %1675 = vmatprep.subr.bf16.mxu1 %v1883_v0 }
 0x333   :  { %1677 = vmatpush3.bf16.msra.mxu1 %v1989_v22 }
 0x334   :  { %1678 = vmatprep.subr.bf16.mxu1 %v1883_v0 }
 0x337   :  { %1680 = vmatpush3.bf16.msra.mxu1 %v1995_v25 }
 0x338   :  { %1681 = vmatprep.subr.bf16.mxu1 %v1883_v0 }
 0x33b   :  { %1683 = vmatpush3.bf16.msra.mxu1 %v2001_v28 }
 0x33c   :  { %1708 = vmatprep.subr.bf16.mxu1 %v1883_v0 }
 0x3f1   :  { %v460_v24 = vpop.f32.mrb[8].mxu1 }
 0x3f2   :  { %v464_v26 = vadd.f32 %v460_v24, %v189_v23  ;;  %v1344_v27 = vpop.f32.mrb[9].mxu1 }
 0x3f3   :  { %v906_v27 = vld [vmem:[#allocation4 + $0x10] sm:$0xff] }
 0x3f4   :  { %1807 = vtanh.f32 %v464_v26 }
 0x3fe   :  { %v1808_v29 = vpop.eup %1807 }
 0x3ff   :  { %v466_v30 = vmul.f32 %v1808_v29, %v2037_v39  ;;  %v907_v29 = vld [vmem:[#allocation4 + $0x18] sm:$0xff] }
 0x401   :  { %v467_v32 = vadd.f32 %v466_v30, %v2039_v41 }
 0x403   :  { %470 = vrot.lane.b32.xlu1 %v467_v32, %s1889_s29  ;;  %468 = vrot.lane.b32.xlu0 %v467_v32, %s1888_s28 }
 0x407   :  { %472 = vrot.lane.b32.xlu0 %v467_v32, %s1887_s3 }
 0x475   :  { %v471_v33 = vpop.permute.xlu1 %470  ;;  %v469_v34 = vpop.permute.xlu0 %468 }
 0x476   :  { %v475_v35 = vmul.f32 %v471_v33, %v467_v32  ;;  %v474_v36 = vmul.f32 %v469_v34, %v391_v9  ;;  %v1760_v34 = vpack.c.bf16 %v907_v29, %v906_v27 }
 0x478   :  { %v476_v37 = vadd.f32 %v475_v35, %v474_v36  ;;  %v908_v35 = vld [vmem:[#allocation4 + $0x20] sm:$0xff]  ;;  %v909_v36 = vld [vmem:[#allocation4 + $0x28] sm:$0xff] }
 0x479   :  { %v473_v40 = vpop.permute.xlu0 %472 }
 0x47a   :  { %1809 = vtanh.f32 %v476_v37 }
 0x484   :  { %v1810_v38 = vpop.eup %1809 }
 0x485   :  { %v2134_v42 = vmul.f32 %v1810_v38, %v473_v40  ;;  %v910_v38 = vld [vmem:[#allocation4 + $0x30] sm:$0xff]  ;;  %v911_v40 = vld [vmem:[#allocation4 + $0x38] sm:$0xff] }
 0x487   :  { %1378 = vmatmul.mubr.f32.vlgmr.msra.gmra.mrb[4].mxu0 %v2134_v42 }
 0x488   :  { %1686 = vmatpush3.bf16.msra.mxu0 %v1952_v5  ;;  %1447 = vmatprep.mubr.msk.f32.mxu0 %vm1884_vm0, %v1885_v1 }
 0x489   :  { %1687 = vmatprep.subr.bf16.mxu0 %v1883_v0 }
 0x48c   :  { %1689 = vmatpush3.bf16.msra.mxu0 %v1955_v7 }
 0x48d   :  { %1690 = vmatprep.subr.bf16.mxu0 %v1883_v0 }
 0x490   :  { %1692 = vmatpush3.bf16.msra.mxu0 %v1969_v13 }
 0x491   :  { %1693 = vmatprep.subr.bf16.mxu0 %v1883_v0 }
 0x494   :  { %1695 = vmatpush3.bf16.msra.mxu0 %v1977_v16 }
 0x495   :  { %1696 = vmatprep.subr.bf16.mxu0 %v1883_v0 }
 0x498   :  { %1698 = vmatpush3.bf16.msra.mxu0 %v1983_v19 }
 0x499   :  { %1699 = vmatprep.subr.bf16.mxu0 %v1883_v0 }
 0x49c   :  { %1701 = vmatpush3.bf16.msra.mxu0 %v1989_v22 }
 0x49d   :  { %1702 = vmatprep.subr.bf16.mxu0 %v1883_v0 }
 0x4a0   :  { %1704 = vmatpush3.bf16.msra.mxu0 %v1995_v25 }
 0x4a1   :  { %1705 = vmatprep.subr.bf16.mxu0 %v1883_v0 }
 0x4a4   :  { %1707 = vmatpush3.bf16.msra.mxu0 %v2001_v28 }
 0x4a5   :  { %1732 = vmatprep.subr.bf16.mxu0 %v1883_v0 }
 0x55a   :  { %v545_v44 = vpop.f32.mrb[4].mxu0 }
 0x55b   :  { %v549_v45 = vadd.f32 %v545_v44, %v194_v43  ;;  %v1379_v46 = vpop.f32.mrb[5].mxu0  ;;  %v1768_v43 = vpack.c.bf16 %v911_v40, %v910_v38  ;;  %v912_v44 = vld [vmem:[#allocation4 + $0x40] sm:$0xff] }
 0x55d   :  { %1811 = vtanh.f32 %v549_v45  ;;  %v913_v45 = vld [vmem:[#allocation4 + $0x48] sm:$0xff] }
 0x55e   :  { %v1772_v46 = vpack.c.bf16 %v913_v45, %v912_v44 }
 0x567   :  { %v1812_v47 = vpop.eup %1811 }
 0x568   :  { %v551_v48 = vmul.f32 %v1812_v47, %v2037_v39  ;;  %v914_v47 = vld [vmem:[#allocation4 + $0x50] sm:$0xff] }
 0x56a   :  { %v552_v49 = vadd.f32 %v551_v48, %v2039_v41  ;;  %v915_v48 = vld [vmem:[#allocation4 + $0x58] sm:$0xff] }
 0x56c   :  { %555 = vrot.lane.b32.xlu0 %v552_v49, %s1889_s29  ;;  %553 = vrot.lane.b32.xlu1 %v552_v49, %s1888_s28 }
 0x570   :  { %557 = vrot.lane.b32.xlu1 %v552_v49, %s1887_s3 }
 0x5de   :  { %v556_v50 = vpop.permute.xlu0 %555  ;;  %v554_v52 = vpop.permute.xlu1 %553 }
 0x5df   :  { %v560_v53 = vmul.f32 %v556_v50, %v552_v49  ;;  %v559_v54 = vmul.f32 %v554_v52, %v476_v37  ;;  %v1764_v37 = vpack.c.bf16 %v909_v36, %v908_v35  ;;  %v1776_v49 = vpack.c.bf16 %v915_v48, %v914_v47  ;;  %v916_v50 = vld [vmem:[#allocation4 + $0x60] sm:$0xff]  ;;  %v917_v52 = vld [vmem:[#allocation4 + $0x68] sm:$0xff] }
 0x5e1   :  { %v561_v55 = vadd.f32 %v560_v53, %v559_v54  ;;  %v918_v53 = vld [vmem:[#allocation4 + $0x70] sm:$0xff]  ;;  %v919_v54 = vld [vmem:[#allocation4 + $0x78] sm:$0xff] }
 0x5e2   :  { %v558_v57 = vpop.permute.xlu1 %557 }
 0x5e3   :  { %1813 = vtanh.f32 %v561_v55 }
 0x5ed   :  { %v1814_v56 = vpop.eup %1813 }
 0x5ee   :  { %v2161_v58 = vmul.f32 %v1814_v56, %v558_v57  ;;  %v209_v56 = vadd.f32 %v2034_v31, %v2126_v21 }
 0x5f0   :  { %1413 = vmatmul.mubr.f32.vlgmr.msra.gmra.mrb[10].mxu1 %v2161_v58 }
 0x5f1   :  { %1710 = vmatpush3.bf16.msra.mxu1 %v1952_v5  ;;  %1482 = vmatprep.mubr.msk.f32.mxu1 %vm1884_vm0, %v1885_v1 }
 0x5f2   :  { %1711 = vmatprep.subr.bf16.mxu1 %v1883_v0 }
 0x5f5   :  { %1713 = vmatpush3.bf16.msra.mxu1 %v1955_v7 }
 0x5f6   :  { %1714 = vmatprep.subr.bf16.mxu1 %v1883_v0 }
 0x5f9   :  { %1716 = vmatpush3.bf16.msra.mxu1 %v1969_v13 }
 0x5fa   :  { %1717 = vmatprep.subr.bf16.mxu1 %v1883_v0 }
 0x5fd   :  { %1719 = vmatpush3.bf16.msra.mxu1 %v1977_v16 }
 0x5fe   :  { %1720 = vmatprep.subr.bf16.mxu1 %v1883_v0 }
 0x601   :  { %1722 = vmatpush3.bf16.msra.mxu1 %v1983_v19 }
 0x602   :  { %1723 = vmatprep.subr.bf16.mxu1 %v1883_v0 }
 0x605   :  { %1725 = vmatpush3.bf16.msra.mxu1 %v1989_v22 }
 0x606   :  { %1726 = vmatprep.subr.bf16.mxu1 %v1883_v0 }
 0x609   :  { %1728 = vmatpush3.bf16.msra.mxu1 %v1995_v25 }
 0x60a   :  { %1729 = vmatprep.subr.bf16.mxu1 %v1883_v0 }
 0x60d   :  { %1731 = vmatpush3.bf16.msra.mxu1 %v2001_v28 }
 0x6c3   :  { %v630_v60 = vpop.f32.mrb[10].mxu1 }
 0x6c4   :  { %v634_v61 = vadd.f32 %v630_v60, %v199_v59  ;;  %v1414_v62 = vpop.f32.mrb[11].mxu1 }
 0x6c6   :  { %1815 = vtanh.f32 %v634_v61 }
 0x6d0   :  { %v1816_v63 = vpop.eup %1815 }
 0x6d1   :  { %v636_v2 = vmul.f32 %v1816_v63, %v2037_v39 }
 0x6d3   :  { %v637_v3 = vadd.f32 %v636_v2, %v2039_v41 }
 0x6d5   :  { %640 = vrot.lane.b32.xlu1 %v637_v3, %s1889_s29  ;;  %638 = vrot.lane.b32.xlu0 %v637_v3, %s1888_s28 }
 0x6d9   :  { %642 = vrot.lane.b32.xlu0 %v637_v3, %s1887_s3 }
 0x747   :  { %v641_v4 = vpop.permute.xlu1 %640  ;;  %v639_v6 = vpop.permute.xlu0 %638 }
 0x748   :  { %v645_v8 = vmul.f32 %v641_v4, %v637_v3  ;;  %v644_v9 = vmul.f32 %v639_v6, %v561_v55  ;;  %v1784_v55 = vpack.c.bf16 %v919_v54, %v918_v53 }
 0x74a   :  { %v646_v10 = vadd.f32 %v645_v8, %v644_v9 }
 0x74b   :  { %v643_v14 = vpop.permute.xlu0 %642 }
 0x74c   :  { %1817 = vtanh.f32 %v646_v10 }
 0x756   :  { %v1818_v11 = vpop.eup %1817 }
 0x757   :  { %v2188_v15 = vmul.f32 %v1818_v11, %v643_v14 }
 0x759   :  { %1448 = vmatmul.mubr.f32.vlgmr.msra.gmra.mrb[6].mxu0 %v2188_v15 }
 0x75a   :  { %1734 = vmatpush3.bf16.msra.mxu0 %v1952_v5  ;;  %1517 = vmatprep.mubr.msk.f32.mxu0 %vm1884_vm0, %v1885_v1  ;;  %v204_v1 = vadd.f32 %v2120_v17, %v2034_v31 }
 0x75b   :  { %1735 = vmatprep.subr.bf16.mxu0 %v1883_v0 }
 0x75e   :  { %1737 = vmatpush3.bf16.msra.mxu0 %v1955_v7 }
 0x75f   :  { %1738 = vmatprep.subr.bf16.mxu0 %v1883_v0 }
 0x762   :  { %1740 = vmatpush3.bf16.msra.mxu0 %v1969_v13 }
 0x763   :  { %1741 = vmatprep.subr.bf16.mxu0 %v1883_v0 }
 0x766   :  { %1743 = vmatpush3.bf16.msra.mxu0 %v1977_v16 }
 0x767   :  { %1744 = vmatprep.subr.bf16.mxu0 %v1883_v0 }
 0x76a   :  { %1746 = vmatpush3.bf16.msra.mxu0 %v1983_v19 }
 0x76b   :  { %1747 = vmatprep.subr.bf16.mxu0 %v1883_v0 }
 0x76e   :  { %1749 = vmatpush3.bf16.msra.mxu0 %v1989_v22 }
 0x76f   :  { %1750 = vmatprep.subr.bf16.mxu0 %v1883_v0 }
 0x772   :  { %1752 = vmatpush3.bf16.msra.mxu0 %v1995_v25  ;;  %v904_v25 = vld [vmem:[#allocation4] sm:$0xff] }
 0x773   :  { %1753 = vmatprep.subr.bf16.mxu0 %v1883_v0  ;;  %v905_v0 = vld [vmem:[#allocation4 + $0x8] sm:$0xff] }
 0x774   :  { %v1756_v18 = vpack.c.bf16 %v905_v0, %v904_v25  ;;  %v214_v25 = vadd.f32 %v2124_v20, %v2034_v31 }
 0x776   :  { %1755 = vmatpush3.bf16.msra.mxu0 %v2001_v28  ;;  %1757 = vmatprep.subr.bf16.mxu1 %v1756_v18 }
 0x82c   :  { %v715_v5 = vpop.f32.mrb[6].mxu0 }
 0x82d   :  { %v719_v7 = vadd.f32 %v715_v5, %v204_v1  ;;  %v1449_v13 = vpop.f32.mrb[7].mxu0 }
 0x82f   :  { %1819 = vtanh.f32 %v719_v7 }
 0x839   :  { %v1820_v16 = vpop.eup %1819 }
 0x83a   :  { %v721_v19 = vmul.f32 %v1820_v16, %v2037_v39 }
 0x83c   :  { %v722_v22 = vadd.f32 %v721_v19, %v2039_v41 }
 0x83e   :  { %725 = vrot.lane.b32.xlu0 %v722_v22, %s1889_s29  ;;  %723 = vrot.lane.b32.xlu1 %v722_v22, %s1888_s28 }
 0x842   :  { %727 = vrot.lane.b32.xlu1 %v722_v22, %s1887_s3 }
 0x8b0   :  { %v726_v28 = vpop.permute.xlu0 %725  ;;  %v724_v17 = vpop.permute.xlu1 %723 }
 0x8b1   :  { %v730_v23 = vmul.f32 %v726_v28, %v722_v22  ;;  %v729_v24 = vmul.f32 %v724_v17, %v646_v10 }
 0x8b3   :  { %v2215_v26 = vadd.f32 %v730_v23, %v729_v24 }
 0x8b4   :  { %v728_v32 = vpop.permute.xlu1 %727 }
 0x8b5   :  { %1821 = vtanh.f32 %v2215_v26 }
 0x8bf   :  { %v1822_v30 = vpop.eup %1821 }
 0x8c0   :  { %v733_v33 = vmul.f32 %v1822_v30, %v728_v32 }
 0x8c2   :  { %1483 = vmatmul.mubr.f32.vlgmr.msra.gmra.mrb[12].mxu1 %v733_v33 }
 0x8c3   :  { %1759 = vmatpush3.bf16.msra.mxu1 %v1756_v18  ;;  %1552 = vmatprep.mubr.f32.mxu1 %v2046_v51  ;;  %v1780_v51 = vpack.c.bf16 %v917_v52, %v916_v50 }
 0x8c4   :  { %1761 = vmatprep.subr.bf16.mxu1 %v1760_v34 }
 0x8c7   :  { %1763 = vmatpush3.bf16.msra.mxu1 %v1760_v34 }
 0x8c8   :  { %1765 = vmatprep.subr.bf16.mxu1 %v1764_v37 }
 0x8cb   :  { %1767 = vmatpush3.bf16.msra.mxu1 %v1764_v37 }
 0x8cc   :  { %1769 = vmatprep.subr.bf16.mxu1 %v1768_v43 }
 0x8cf   :  { %1771 = vmatpush3.bf16.msra.mxu1 %v1768_v43 }
 0x8d0   :  { %1773 = vmatprep.subr.bf16.mxu1 %v1772_v46 }
 0x8d3   :  { %1775 = vmatpush3.bf16.msra.mxu1 %v1772_v46 }
 0x8d4   :  { %1777 = vmatprep.subr.bf16.mxu1 %v1776_v49 }
 0x8d7   :  { %1779 = vmatpush3.bf16.msra.mxu1 %v1776_v49 }
 0x8d8   :  { %1781 = vmatprep.subr.bf16.mxu1 %v1780_v51 }
 0x8db   :  { %1783 = vmatpush3.bf16.msra.mxu1 %v1780_v51 }
 0x8dc   :  { %1785 = vmatprep.subr.bf16.mxu1 %v1784_v55 }
 0x8df   :  { %1787 = vmatpush3.bf16.msra.mxu1 %v1784_v55 }
 0x8e2   :  { %1553 = vmatmul.mubr.f32.vlgmr.msra.gmra.mrb[14].mxu1 %v2099_v12  ;;  %v1056_v12 = vld [vmem:[%s2270_s5] ss:$0 sm:$0xff] }
 0x8e3   :  { %1555 = vmatprep.mubr.f32.mxu1 %v2134_v42 }
 0x8e6   :  { %1556 = vmatmul.mubr.f32.gmra.mrb[16].mxu1 %v2161_v58 }
 0x8e7   :  { %1558 = vmatprep.mubr.f32.mxu1 %v2188_v15 }
 0x8ea   :  { %1559 = vmatmul.mubr.f32.gmra.mrb[18].mxu1 %v733_v33 }
 0x995   :  { %v800_v57 = vpop.f32.mrb[12].mxu1 }
 0x996   :  { %v804_v59 = vadd.f32 %v800_v57, %v209_v56  ;;  %v1484_v60 = vpop.f32.mrb[13].mxu1 }
 0x998   :  { %1823 = vtanh.f32 %v804_v59 }
 0x9a2   :  { %v1824_v61 = vpop.eup %1823 }
 0x9a3   :  { %v806_v62 = vmul.f32 %v1824_v61, %v2037_v39 }
 0x9a5   :  { %v807_v63 = vadd.f32 %v806_v62, %v2039_v41 }
 0x9a7   :  { %810 = vrot.lane.b32.xlu1 %v807_v63, %s1889_s29  ;;  %808 = vrot.lane.b32.xlu0 %v807_v63, %s1888_s28 }
 0x9ab   :  { %812 = vrot.lane.b32.xlu0 %v807_v63, %s1887_s3 }
 0x9b5   :  { %v1554_v21 = vpop.f32.mrb[14].mxu1 }
 0x9b6   :  { %v999_v42 = vadd.f32 %v1554_v21, %v1056_v12  ;;  %v993_v58 = vpop.f32.mrb[15].mxu1 }
 0x9b7   :  { %v994_v2 = vadd.f32 %v1056_v12, %v993_v58 }
 0x9b8   :  { %1033 = vst [vmem:[%s2271_s6 + $0x8] sm:$0xff] %v999_v42 }
 0x9b9   :  { %1032 = vst [vmem:[%s2271_s6] sm:$0xff] %v994_v2  ;;  %v1557_v3 = vpop.f32.mrb[16].mxu1 }
 0x9ba   :  { %v1009_v4 = vadd.f32 %v1557_v3, %v1056_v12  ;;  %v1003_v6 = vpop.f32.mrb[17].mxu1 }
 0x9bb   :  { %v1004_v8 = vadd.f32 %v1056_v12, %v1003_v6 }
 0x9bc   :  { %1035 = vst [vmem:[%s2271_s6 + $0x18] sm:$0xff] %v1009_v4 }
 0x9bd   :  { %1034 = vst [vmem:[%s2271_s6 + $0x10] sm:$0xff] %v1004_v8  ;;  %v1560_v9 = vpop.f32.mrb[18].mxu1 }
 0x9be   :  { %v1019_v10 = vadd.f32 %v1560_v9, %v1056_v12  ;;  %v1013_v11 = vpop.f32.mrb[19].mxu1 }
 0x9bf   :  { %v1014_v14 = vadd.f32 %v1056_v12, %v1013_v11 }
 0x9c0   :  { %1037 = vst [vmem:[%s2271_s6 + $0x28] sm:$0xff] %v1019_v10 }
 0x9c1   :  { %1036 = vst [vmem:[%s2271_s6 + $0x20] sm:$0xff] %v1014_v14 }
 0xa19   :  { %v811_v15 = vpop.permute.xlu1 %810  ;;  %v809_v1 = vpop.permute.xlu0 %808 }
 0xa1a   :  { %v815_v5 = vmul.f32 %v811_v15, %v807_v63  ;;  %v814_v7 = vmul.f32 %v809_v1, %v2215_v26 }
 0xa1c   :  { %v816_v13 = vadd.f32 %v815_v5, %v814_v7 }
 0xa1d   :  { %v813_v19 = vpop.permute.xlu0 %812 }
 0xa1e   :  { %1825 = vtanh.f32 %v816_v13 }
 0xa28   :  { %v1826_v16 = vpop.eup %1825 }
 0xa29   :  { %v818_v22 = vmul.f32 %v1826_v16, %v813_v19 }
 0xa2b   :  { %1518 = vmatmul.mubr.f32.vlgmr.msra.gmra.mrb[8].mxu0 %v818_v22  ;;  %1561 = vmatprep.mubr.f32.mxu1 %v818_v22 }
 0xafe   :  { %v885_v0 = vpop.f32.mrb[8].mxu0 }
 0xaff   :  { %v889_v18 = vadd.f32 %v885_v0, %v214_v25  ;;  %v1519_v28 = vpop.f32.mrb[9].mxu0 }
 0xb01   :  { %1827 = vtanh.f32 %v889_v18 }
 0xb0b   :  { %v1828_v17 = vpop.eup %1827 }
 0xb0c   :  { %v891_v23 = vmul.f32 %v1828_v17, %v2037_v39 }
 0xb0e   :  { %v892_v24 = vadd.f32 %v891_v23, %v2039_v41 }
 0xb10   :  { %895 = vrot.lane.b32.xlu0 %v892_v24, %s1889_s29  ;;  %893 = vrot.lane.b32.xlu1 %v892_v24, %s1888_s28 }
 0xb14   :  { %897 = vrot.lane.b32.xlu1 %v892_v24, %s1887_s3 }
 0xb82   :  { %v896_v26 = vpop.permute.xlu0 %895  ;;  %v894_v27 = vpop.permute.xlu1 %893 }
 0xb83   :  { %v900_v29 = vmul.f32 %v896_v26, %v892_v24  ;;  %v899_v30 = vmul.f32 %v894_v27, %v816_v13 }
 0xb85   :  { %v901_v31 = vadd.f32 %v900_v29, %v899_v30 }
 0xb86   :  { %v898_v32 = vpop.permute.xlu1 %897 }
 0xb87   :  { %1829 = vtanh.f32 %v901_v31 }
 0xb91   :  { %v1830_v20 = vpop.eup %1829 }
 0xb92   :  { %v903_v33 = vmul.f32 %v1830_v20, %v898_v32 }
 0xb94   :  { %1562 = vmatmul.mubr.f32.gmra.mrb[20].mxu1 %v903_v33 }
 0xc67   :  { %v1563_v34 = vpop.f32.mrb[20].mxu1 }
 0xc68   :  { %v1029_v39 = vadd.f32 %v1563_v34, %v1056_v12  ;;  %v1023_v35 = vpop.f32.mrb[21].mxu1 }
 0xc69   :  { %v1024_v41 = vadd.f32 %v1056_v12, %v1023_v35 }
 0xc6a   :  { %1039 = vst [vmem:[%s2271_s6 + $0x38] sm:$0xff] %v1029_v39 }
 0xc6b   :  { %1038 = vst [vmem:[%s2271_s6 + $0x30] sm:$0xff] %v1024_v41 }
 0xc6c   :  { %1044 = vsyncpa [#allocation3], 1 }
 0xc6d   :  { %1045 = vsyncpa [#allocation5], 1 }

</bundles_post_ra>
